<compile_context>
chip_gen: v7x
topology: tpu7x:2x2x1
jax: 0.10.0
libtpu: 0.0.40
codegen_flags: <defaults>
</compile_context>

<pallas_src>
import functools

import jax
import jax.numpy as jnp
from jax import lax
from jax.experimental import pallas as pl
from jax.experimental.pallas import tpu as pltpu

LANE = 128
SUBLANE = 8
CHUNK_ROWS = 256            # 256 x 128 f32 = 32 vregs live per inner chunk
TILE_BYTES = 4 << 20        # ~4 MiB per input tile (8 MiB double-buffered)


def _per_element_loss(x, target_val, mode):
    """Elementwise loss in f32. x must already be f32."""
    z = jnp.float32(target_val)
    if mode == "lsgan":
        d = x - z
        return d * d
    elif mode == "vanilla":
        # BCEWithLogitsLoss: max(x,0) - x*z + log(1 + exp(-|x|))
        return jnp.maximum(x, 0.0) - x * z + jnp.log1p(jnp.exp(-jnp.abs(x)))
    raise ValueError("invalid mode.")


def _gan_loss_kernel(x_ref, out_ref, *, mode, target_val, rows_valid,
                     tile_rows, chunk_rows):
    i = pl.program_id(0)                       # streaming reduction step

    @pl.when(i == 0)
    def _init():
        out_ref[...] = jnp.zeros_like(out_ref)

    row_base = i * tile_rows                   # logical first row of this block
    nchunks = tile_rows // chunk_rows          # static
    unroll = nchunks <= 8

    def chunk_partial(k, masked):
        start = pl.multiple_of(k * chunk_rows, chunk_rows)
        x = x_ref[pl.ds(start, chunk_rows), :].astype(jnp.float32)
        per_elem = _per_element_loss(x, target_val, mode)
        if masked:
            rid = (row_base + k * chunk_rows
                   + lax.broadcasted_iota(jnp.int32, per_elem.shape, 0))
            per_elem = jnp.where(rid < rows_valid, per_elem, 0.0)
        # (chunk_rows,128) -> (chunk_rows/8, 8, 128) summed over leading dim:
        # pure VPU elementwise adds into one vreg-shaped partial.
        return per_elem.reshape(-1, SUBLANE, LANE).sum(axis=0)

    in_bounds = row_base + tile_rows <= rows_valid

    @pl.when(in_bounds)
    def _fast():                               # full block: no mask arithmetic
        acc = lax.fori_loop(
            0, nchunks, lambda k, a: a + chunk_partial(k, masked=False),
            jnp.zeros((SUBLANE, LANE), jnp.float32), unroll=unroll)
        out_ref[...] += acc

    @pl.when(jnp.logical_not(in_bounds))
    def _masked():                             # ragged last block
        acc = lax.fori_loop(
            0, nchunks, lambda k, a: a + chunk_partial(k, masked=True),
            jnp.zeros((SUBLANE, LANE), jnp.float32), unroll=unroll)
        out_ref[...] += acc


def gan_loss(prediction, is_real, mode="lsgan"):
    """Pallas equivalent of GANLoss(mode)(prediction, is_real) -> scalar mean loss."""
    if mode not in ("lsgan", "vanilla"):
        raise ValueError("invalid mode.")
    target_val = 1.0 if is_real else 0.0

    flat = prediction.reshape(-1)              # keep dtype; no pad, no copy
    n = flat.shape[0]
    rows = n // LANE

    # Tiny inputs: kernel launch not worth it.
    if rows < SUBLANE:
        return jnp.mean(_per_element_loss(flat.astype(jnp.float32),
                                          target_val, mode))

    main = rows * LANE
    x2d = (flat if main == n else flat[:main]).reshape(rows, LANE)

    # Dtype-aware tile: ~4 MiB per block regardless of element width.
    dtype_bytes = jnp.dtype(prediction.dtype).itemsize
    max_tile_rows = max(CHUNK_ROWS,
                        (TILE_BYTES // (LANE * dtype_bytes))
                        // CHUNK_ROWS * CHUNK_ROWS)

    if rows >= CHUNK_ROWS:
        tile = min(max_tile_rows, (rows // CHUNK_ROWS) * CHUNK_ROWS)
        chunk = CHUNK_ROWS
    else:
        tile = (rows // SUBLANE) * SUBLANE     # >= 8, multiple of 8
        chunk = tile
    blocks = pl.cdiv(rows, tile)

    kernel = functools.partial(
        _gan_loss_kernel, mode=mode, target_val=target_val,
        rows_valid=rows, tile_rows=tile, chunk_rows=chunk)

    if mode == "lsgan":
        flops, transc = 3 * main, 0
    else:
        flops, transc = 6 * main, 2 * main
    cost = pl.CostEstimate(
        flops=flops, transcendentals=transc,
        bytes_accessed=main * int(dtype_bytes) + SUBLANE * LANE * 4)

    partials = pl.pallas_call(
        kernel,
        out_shape=jax.ShapeDtypeStruct((SUBLANE, LANE), jnp.float32),
        grid_spec=pltpu.PrefetchScalarGridSpec(
            num_scalar_prefetch=0,
            grid=(blocks,),
            in_specs=[pl.BlockSpec((tile, LANE), lambda i: (i, 0))],
            out_specs=pl.BlockSpec((SUBLANE, LANE), lambda i: (0, 0)),
        ),
        compiler_params=pltpu.CompilerParams(
            dimension_semantics=("arbitrary",)),
        cost_estimate=cost,
    )(x2d)

    total = jnp.sum(partials)                  # single tiny cross-lane reduce
    if main != n:                              # <128-element tail handled in jnp
        tail = flat[main:].astype(jnp.float32)
        total = total + jnp.sum(_per_element_loss(tail, target_val, mode))
    return total / jnp.float32(n)


def _ref_loss(x, is_real, mode):
    xf = x.astype(jnp.float32)
    z = 1.0 if is_real else 0.0
    if mode == "lsgan":
        return jnp.mean((xf - z) ** 2)
    return jnp.mean(jnp.maximum(xf, 0.0) - xf * z + jnp.log1p(jnp.exp(-jnp.abs(xf))))


if __name__ == "__main__":
    key = jax.random.PRNGKey(0)
    # Typical discriminator output (NCHW patch-GAN logits), small shape.
    prediction = jax.random.normal(key, (2, 4, 16, 16), dtype=jnp.float32)

    checks = [
        (prediction, True, "lsgan"),
        (prediction, False, "lsgan"),
        (prediction, True, "vanilla"),
        (prediction, False, "vanilla"),
    ]
    for x, is_real, mode in checks:
        got = jax.block_until_ready(gan_loss(x, is_real, mode=mode))
        want = _ref_loss(x, is_real, mode)
        assert jnp.allclose(got, want, rtol=1e-5, atol=1e-5), (mode, is_real, got, want)

    # Ragged shape (exercises partial last block + <128 tail path).
    key2 = jax.random.PRNGKey(0)
    pred_ragged = jax.random.normal(key2, (2, 3, 37, 29), dtype=jnp.float32)
    got = jax.block_until_ready(gan_loss(pred_ragged, True, mode="lsgan"))
    want = _ref_loss(pred_ragged, True, "lsgan")
    assert jnp.allclose(got, want, rtol=1e-5, atol=1e-5), (got, want)

    # bf16 input (stays bf16 in HBM; upcast in-kernel).
    pred_bf16 = jax.random.normal(key2, (2, 4, 16, 16), dtype=jnp.bfloat16)
    got = jax.block_until_ready(gan_loss(pred_bf16, False, mode="vanilla"))
    want = _ref_loss(pred_bf16, False, "vanilla")
    assert jnp.allclose(got, want, rtol=1e-5, atol=1e-5), (got, want)

    # Larger input to exercise the multi-chunk fori_loop / multi-block path.
    pred_big = jax.random.normal(key, (4, 8, 128, 130), dtype=jnp.float32)
    got = jax.block_until_ready(gan_loss(pred_big, True, mode="lsgan"))
    want = _ref_loss(pred_big, True, "lsgan")
    assert jnp.allclose(got, want, rtol=1e-5, atol=1e-5), (got, want)

    print("KERNEL_OK")
</pallas_src>

<mosaic_0001>
module attributes {stable_mosaic.version = 11 : i64} {
  func.func @_gan_loss_kernel(%arg0: i32, %arg1: memref<16x128xf32, #tpu.memory_space<vmem>>, %arg2: memref<8x128xf32, #tpu.memory_space<vmem>>) attributes {dimension_semantics = [#tpu.dimension_semantics<arbitrary>], iteration_bounds = array<i64: 1>, scalar_prefetch = 0 : i64, scratch_operands = 0 : i64, tpu.core_type = #tpu.core_type<tc>, window_params = [{transform_indices = @transform_0, window_bounds = array<i64: 16, 128>}, {pipeline_mode = #tpu.pipeline_mode<synchronous>, transform_indices = @transform_1, window_bounds = array<i64: 8, 128>}]} {
    %c0_i32 = arith.constant 0 : i32
    %0 = arith.cmpi eq, %arg0, %c0_i32 : i32
    %1 = arith.extui %0 : i1 to i32
    %c0_i32_0 = arith.constant 0 : i32
    %2 = arith.cmpi ne, %1, %c0_i32_0 : i32
    scf.if %2 {
      %cst = arith.constant 0.000000e+00 : f32
      %11 = vector.broadcast %cst : f32 to vector<8x128xf32>
      %c0 = arith.constant 0 : index
      %c0_5 = arith.constant 0 : index
      %12 = vector.load %arg2[%c0, %c0_5] : memref<8x128xf32, #tpu.memory_space<vmem>>, vector<8x128xf32>
      tpu.vector_store %arg2[%c0, %c0_5], %11 {strides = array<i32>} : memref<8x128xf32, #tpu.memory_space<vmem>>, vector<8x128xf32>,
    } else {
    }
    %c16_i32 = arith.constant 16 : i32
    %3 = arith.muli %arg0, %c16_i32 : i32
    %c16_i32_1 = arith.constant 16 : i32
    %4 = arith.addi %3, %c16_i32_1 : i32
    %c16_i32_2 = arith.constant 16 : i32
    %5 = arith.cmpi sle, %4, %c16_i32_2 : i32
    %6 = arith.extui %5 : i1 to i32
    %c0_i32_3 = arith.constant 0 : i32
    %7 = arith.cmpi ne, %6, %c0_i32_3 : i32
    scf.if %7 {
      %cst = arith.constant 0.000000e+00 : f32
      %11 = vector.broadcast %cst : f32 to vector<8x128xf32>
      %c0_i32_5 = arith.constant 0 : i32
      %c16_i32_6 = arith.constant 16 : i32
      %12 = arith.muli %c0_i32_5, %c16_i32_6 : i32
      %13 = tpu.assume_multiple %12, 16 : i32
      %14 = arith.index_cast %13 : i32 to index
      %c0 = arith.constant 0 : index
      %15 = vector.load %arg1[%14, %c0] : memref<16x128xf32, #tpu.memory_space<vmem>>, vector<16x128xf32>
      %cst_7 = arith.constant 1.000000e+00 : f32
      %16 = vector.broadcast %cst_7 : f32 to vector<16x128xf32>
      %17 = arith.subf %15, %16 : vector<16x128xf32>
      %18 = arith.mulf %17, %17 : vector<16x128xf32>
      %19 = vector.shape_cast %18 : vector<16x128xf32> to vector<2x8x128xf32>
      %cst_8 = arith.constant dense<0.000000e+00> : vector<8x128xf32>
      %20 = vector.multi_reduction <add>, %19, %cst_8 [0] : vector<2x8x128xf32> to vector<8x128xf32>
      %21 = arith.addf %11, %20 : vector<8x128xf32>
      %c1_i32 = arith.constant 1 : i32
      %c0_9 = arith.constant 0 : index
      %c0_10 = arith.constant 0 : index
      %22 = vector.load %arg2[%c0_9, %c0_10] : memref<8x128xf32, #tpu.memory_space<vmem>>, vector<8x128xf32>
      %23 = arith.addf %22, %21 : vector<8x128xf32>
      %c0_11 = arith.constant 0 : index
      %c0_12 = arith.constant 0 : index
      %24 = vector.load %arg2[%c0_11, %c0_12] : memref<8x128xf32, #tpu.memory_space<vmem>>, vector<8x128xf32>
      tpu.vector_store %arg2[%c0_11, %c0_12], %23 {strides = array<i32>} : memref<8x128xf32, #tpu.memory_space<vmem>>, vector<8x128xf32>,
    } else {
    }
    %true = arith.constant true
    %8 = arith.xori %5, %true : i1
    %9 = arith.extui %8 : i1 to i32
    %c0_i32_4 = arith.constant 0 : i32
    %10 = arith.cmpi ne, %9, %c0_i32_4 : i32
    scf.if %10 {
      %cst = arith.constant 0.000000e+00 : f32
      %11 = vector.broadcast %cst : f32 to vector<8x128xf32>
      %c0_i32_5 = arith.constant 0 : i32
      %c16_i32_6 = arith.constant 16 : i32
      %12 = arith.muli %c0_i32_5, %c16_i32_6 : i32
      %13 = tpu.assume_multiple %12, 16 : i32
      %14 = arith.index_cast %13 : i32 to index
      %c0 = arith.constant 0 : index
      %15 = vector.load %arg1[%14, %c0] : memref<16x128xf32, #tpu.memory_space<vmem>>, vector<16x128xf32>
      %cst_7 = arith.constant 1.000000e+00 : f32
      %16 = vector.broadcast %cst_7 : f32 to vector<16x128xf32>
      %17 = arith.subf %15, %16 : vector<16x128xf32>
      %18 = arith.mulf %17, %17 : vector<16x128xf32>
      %c16_i32_8 = arith.constant 16 : i32
      %19 = arith.muli %c0_i32_5, %c16_i32_8 : i32
      %20 = arith.addi %3, %19 : i32
      %21 = tpu.iota {dimensions = array<i32: 0>} : vector<16x128xi32>
      %22 = vector.broadcast %20 : i32 to vector<16x128xi32>
      %23 = arith.addi %22, %21 : vector<16x128xi32>
      %c16_i32_9 = arith.constant 16 : i32
      %24 = vector.broadcast %c16_i32_9 : i32 to vector<16x128xi32>
      %25 = arith.cmpi slt, %23, %24 : vector<16x128xi32>
      %cst_10 = arith.constant 0.000000e+00 : f32
      %26 = vector.broadcast %cst_10 : f32 to vector<16x128xf32>
      %27 = arith.select %25, %18, %26 : vector<16x128xi1>, vector<16x128xf32>
      %28 = vector.shape_cast %27 : vector<16x128xf32> to vector<2x8x128xf32>
      %cst_11 = arith.constant dense<0.000000e+00> : vector<8x128xf32>
      %29 = vector.multi_reduction <add>, %28, %cst_11 [0] : vector<2x8x128xf32> to vector<8x128xf32>
      %30 = arith.addf %11, %29 : vector<8x128xf32>
      %c1_i32 = arith.constant 1 : i32
      %c0_12 = arith.constant 0 : index
      %c0_13 = arith.constant 0 : index
      %31 = vector.load %arg2[%c0_12, %c0_13] : memref<8x128xf32, #tpu.memory_space<vmem>>, vector<8x128xf32>
      %32 = arith.addf %31, %30 : vector<8x128xf32>
      %c0_14 = arith.constant 0 : index
      %c0_15 = arith.constant 0 : index
      %33 = vector.load %arg2[%c0_14, %c0_15] : memref<8x128xf32, #tpu.memory_space<vmem>>, vector<8x128xf32>
      tpu.vector_store %arg2[%c0_14, %c0_15], %32 {strides = array<i32>} : memref<8x128xf32, #tpu.memory_space<vmem>>, vector<8x128xf32>,
    } else {
    }
    return
  }
  func.func @transform_0(%arg0: i32) -> (i32, i32) {
    %c0_i32 = arith.constant 0 : i32
    %c0_i32_0 = arith.constant 0 : i32
    return %arg0, %c0_i32 : i32, i32
  }
  func.func @transform_1(%arg0: i32) -> (i32, i32) {
    %c0_i32 = arith.constant 0 : i32
    %c0_i32_0 = arith.constant 0 : i32
    %c0_i32_1 = arith.constant 0 : i32
    return %c0_i32, %c0_i32_0 : i32, i32
  }
}

</mosaic_0001>

<bundles_post_ra>
// kernel: tpu_custom_call.1
= control target key start
LH: loop header
LB: loop body
LE: loop exit
PB: predicated region body
PF: predicated region fallthrough
CT: control target
= control target key end

     0   :  { %6 = vsyncpa [#allocation3], 0  ;;  %s180_s0 = inlined_call_operand.hbm [shape: f32[16,128], index: 0, kind: input, shape index: {}]   ;;  %s181_s1 = inlined_call_operand.hbm [shape: f32[8,128], index: 1, kind: output, shape index: {}]  }
   0x1   :  { %7 = vsyncpa [#allocation4], 0  ;;  %s142_s6 = smov [#allocation2]   ;;  %s94_s10 = scalar_lea.hbm %s180_s0, 256 }
   0x2   :  { %s13_s7 = sshll.u32 %s142_s6, 4  ;;  %p95_p0 = scmp.ne.s32.totalorder %s180_s0, %s94_s10  ;;  %s14_s7 = int_to_ptr.vmem [resolvable:$true] %s13_s7 }
   0x3   :  { %p98_p1 = scmp.lt.u32.totalorder %s94_s10, %s180_s0 }
   0x5   :  { %p100_p2 = pnand %p98_p1, %p95_p0 }
   0x7   :  { %103 = shalt.err (!%p100_p2)
}
   0x8   :  { %s104_s15 = scalar_lea.vmem %s14_s7, 256  ;;  %p109_p4 = scmp.lt.s32.totalorder %s14_s7, %s14_s7 }
   0x9   :  { %p105_p3 = scmp.ne.s32.totalorder %s14_s7, %s104_s15  ;;  %p110_p5 = scmp.lt.s32.totalorder %s104_s15, %s104_s15 }
   0xb   :  { %p111_p6 = por %p110_p5, %p109_p4 }
   0xd   :  { %p112_p7 = pnand %p111_p6, %p105_p3 }
   0xf   :  { %115 = shalt.err (!%p112_p7)
}
  0x10   :  { %s143_s16 = smov 128   ;;  %s144_s17 = smov 8  }
  0x11   :  { %19 = dma.hbm_to_vmem [thread:$0]  %s180_s0, 256, %s14_s7, [#allocation3], %s143_s16, %s143_s16, %s144_s17  }
  0x12   :  { %138 = dma.done.wait [#allocation3], 256  }
  0x13   :  { %139 = vsyncadd [#allocation3], 4294967040  ;;  %v34_v0 = vld [vmem:[#allocation2] sm:$0xff]  ;;  %v35_v1 = vld [vmem:[#allocation2 + $0x8] sm:$0xff]  ;;  %s145_s20 = smov [#allocation5]  }
  0x14   :  { %v85_v2 = vadd.f32 -1.0, %v34_v0  ;;  %v86_v3 = vadd.f32 -1.0, %v35_v1  ;;  %s76_s21 = sshll.u32 %s145_s20, 4  ;;  %s77_s21 = int_to_ptr.vmem [resolvable:$true] %s76_s21 }
  0x15   :  { %s116_s22 = scalar_lea.vmem %s77_s21, 128  ;;  %p121_p9 = scmp.lt.s32.totalorder %s77_s21, %s77_s21 }
  0x16   :  { %v38_v4 = vmul.f32 %v85_v2, %v85_v2  ;;  %v39_v5 = vmul.f32 %v86_v3, %v86_v3  ;;  %p117_p8 = scmp.ne.s32.totalorder %s77_s21, %s116_s22  ;;  %p122_p10 = scmp.lt.s32.totalorder %s116_s22, %s116_s22 }
  0x18   :  { %v40_v6 = vadd.f32 %v39_v5, %v38_v4  ;;  %p123_p11 = por %p122_p10, %p121_p9 }
  0x1a   :  { %44 = vst [vmem:[#allocation5] sm:$0xff] %v40_v6  ;;  %p124_p12 = pnand %p123_p11, %p117_p8 }
  0x1c   :  { %127 = shalt.err (!%p124_p12)
}
  0x1d   :  { %s128_s24 = scalar_lea.hbm %s181_s1, 128 }
  0x1e   :  { %p129_p13 = scmp.ne.s32.totalorder %s181_s1, %s128_s24  ;;  %p132_p0 = scmp.lt.u32.totalorder %s128_s24, %s181_s1 }
  0x20   :  { %p134_p1 = pnand %p132_p0, %p129_p13 }
  0x22   :  { %137 = shalt.err (!%p134_p1)
}
  0x23   :  { %79 = dma.vmem_to_hbm [thread:$0]  %s77_s21, 128, %s181_s1, [#allocation4]  }
  0x24   :  { %140 = dma.done.wait [#allocation4], 128  }
  0x25   :  { %141 = vsyncadd [#allocation4], 4294967168 }
  0x26   :  { %83 = vsyncpa [#allocation3], 1 }
  0x27   :  { %84 = vsyncpa [#allocation4], 1 }

</bundles_post_ra>
